<compile_context>
chip_gen: v6e
topology: v6e:2x2x1
jax: 0.10.0
libtpu: 0.0.40
codegen_flags: <defaults>
</compile_context>

<pallas_src>
import jax
import jax.numpy as jnp
from jax import lax
from jax.experimental import pallas as pl
from jax.experimental.pallas import tpu as pltpu


def _linear_kernel(x_ref, w_ref, b_ref, o_ref):
    """One row-tile of y = x @ W^T + b.

    x_ref: (TM, C_in)     activation tile (pipelined over the grid)
    w_ref: (C_out, C_in)  weight in PyTorch nn.Linear layout (VMEM-resident)
    b_ref: (1, C_out)     bias (VMEM-resident)
    o_ref: (TM, C_out)    output tile
    """
    acc = lax.dot_general(
        x_ref[...], w_ref[...],
        dimension_numbers=(((1,), (1,)), ((), ())),  # contract C_in with C_in
        preferred_element_type=jnp.float32)
    o_ref[...] = (acc + b_ref[...].astype(jnp.float32)).astype(o_ref.dtype)


def _choose_row_tile(c_in, c_out, itemsize, *, vmem_budget_bytes=24 << 20,
                     tm_max=1024):
    """Largest row tile whose double-buffered footprint fits the VMEM budget."""
    fixed = 2 * (c_out * c_in + c_out) * itemsize          # resident W + bias
    per_row = 2 * (c_in + c_out) * itemsize                # x tile + out tile
    tm = (vmem_budget_bytes - fixed) // max(per_row, 1)
    tm = int(min(tm_max, max(8, tm)))
    return (tm // 8) * 8                                   # f32 sublane multiple


def base_pooler_proj(x_tbc, weight, bias, *, row_tile=None, compute_dtype=None):
    """Applies nn.Linear(in_features, out_features) to a TBC tensor.

    x_tbc:  (T, B, C_in)   float32
    weight: (C_out, C_in)  float32   (PyTorch nn.Linear layout — NOT transposed)
    bias:   (C_out,)       float32
    returns (T, B, C_out)  same dtype as x_tbc
    """
    T, B, C_in = x_tbc.shape
    C_out = weight.shape[0]
    M = T * B
    out_dtype = x_tbc.dtype

    x2d = x_tbc.reshape(M, C_in)
    w = weight                      # keep (C_out, C_in); contraction in-kernel
    b2d = bias.reshape(1, C_out)

    if compute_dtype is not None:   # e.g. jnp.bfloat16 on v6e (bandwidth-bound)
        x2d = x2d.astype(compute_dtype)
        w = w.astype(compute_dtype)

    in_itemsize = jnp.dtype(x2d.dtype).itemsize
    out_itemsize = jnp.dtype(out_dtype).itemsize

    tm = row_tile if row_tile is not None else _choose_row_tile(
        C_in, C_out, in_itemsize)
    if M <= tm:
        tm = M                      # single block == full array dims (legal)
        m_pad = M
    else:
        m_pad = pl.cdiv(M, tm) * tm
        if m_pad != M:
            # Pad rows so every tile DMA is rectangular and stores unmasked.
            x2d = jnp.pad(x2d, ((0, m_pad - M), (0, 0)))

    grid = (m_pad // tm,)

    flops = 2 * M * C_in * C_out
    bytes_accessed = ((M * C_in + C_out * C_in + C_out) * in_itemsize
                      + M * C_out * out_itemsize)

    # VMEM needed: double-buffered x/out tiles + resident (double-buffered) W/b.
    vmem_needed = (2 * (tm * C_in + C_out * C_in) * in_itemsize
                   + 2 * (tm * C_out + C_out) * out_itemsize)
    vmem_limit = min(max(vmem_needed + (2 << 20), 16 << 20), 64 << 20)

    out2d = pl.pallas_call(
        _linear_kernel,
        out_shape=jax.ShapeDtypeStruct((m_pad, C_out), out_dtype),
        grid_spec=pltpu.PrefetchScalarGridSpec(
            num_scalar_prefetch=0,
            grid=grid,
            in_specs=[
                pl.BlockSpec((tm, C_in), lambda i: (i, 0)),      # streamed rows
                pl.BlockSpec((C_out, C_in), lambda i: (0, 0)),   # resident W
                pl.BlockSpec((1, C_out), lambda i: (0, 0)),      # resident bias
            ],
            out_specs=pl.BlockSpec((tm, C_out), lambda i: (i, 0)),
        ),
        compiler_params=pltpu.CompilerParams(
            dimension_semantics=("parallel",),   # v7x megacore shards row tiles
            vmem_limit_bytes=vmem_limit,
        ),
        cost_estimate=pl.CostEstimate(
            flops=flops, transcendentals=0, bytes_accessed=bytes_accessed),
    )(x2d, w, b2d)

    if m_pad != M:
        out2d = out2d[:M]
    return out2d.reshape(T, B, C_out)


class BasePoolerJAX:
    """JAX/Pallas mirror of the PyTorch BasePooler base class."""

    def __init__(self, in_features=768, out_features=512, key=None):
        self.in_features = in_features
        self.out_features = out_features
        if key is None:
            key = jax.random.PRNGKey(0)
        k_w, k_b = jax.random.split(key)
        bound = 1.0 / (in_features ** 0.5)
        # PyTorch nn.Linear layout: (out_features, in_features)
        self.weight = jax.random.uniform(
            k_w, (out_features, in_features), jnp.float32, -bound, bound)
        self.bias = jax.random.uniform(
            k_b, (out_features,), jnp.float32, -bound, bound)

    def proj(self, x_tbc, compute_dtype=None):
        return base_pooler_proj(x_tbc, self.weight, self.bias,
                                compute_dtype=compute_dtype)

    def forward(self, x, dest_len, pad_mask=None, tbc=True):
        # TODO(synk): base class forward raises NotImplemented in PyTorch;
        # concrete pooling logic lives in subclasses.
        raise NotImplementedError

    def get_loss(self):
        pass

    def update_cache(self):
        pass


if __name__ == "__main__":
    key = jax.random.PRNGKey(0)
    k_x, k_p, k_x2 = jax.random.split(key, 3)

    # Small shapes consistent with the module: seq=8, batch=2, hidden 32 -> 16.
    T, B, C_in, C_out = 8, 2, 32, 16
    x = jax.random.normal(k_x, (T, B, C_in), jnp.float32)   # layout: TBC

    pooler = BasePoolerJAX(in_features=C_in, out_features=C_out, key=k_p)
    y = pooler.proj(x)
    jax.block_until_ready(y)

    y_ref = x @ pooler.weight.T + pooler.bias
    assert y.shape == (T, B, C_out)
    assert jnp.allclose(y, y_ref, atol=1e-4, rtol=1e-4)

    # Exercise the tiled + padded path: M = 17*6 = 102 rows, forced 16-row tile
    # -> grid of 7 with the last tile padded in the wrapper.
    T2, B2 = 17, 6
    x2 = jax.random.normal(k_x2, (T2, B2, C_in), jnp.float32)
    y2 = base_pooler_proj(x2, pooler.weight, pooler.bias, row_tile=16)
    jax.block_until_ready(y2)
    y2_ref = x2 @ pooler.weight.T + pooler.bias
    assert y2.shape == (T2, B2, C_out)
    assert jnp.allclose(y2, y2_ref, atol=1e-4, rtol=1e-4)

    print("KERNEL_OK")
</pallas_src>

<mosaic_0001>
module attributes {stable_mosaic.version = 11 : i64} {
  func.func @_linear_kernel(%arg0: i32, %arg1: memref<16x32xf32, #tpu.memory_space<vmem>>, %arg2: memref<16x32xf32, #tpu.memory_space<vmem>>, %arg3: memref<1x16xf32, #tpu.memory_space<vmem>>, %arg4: memref<16x16xf32, #tpu.memory_space<vmem>>) attributes {dimension_semantics = [#tpu.dimension_semantics<parallel>], iteration_bounds = array<i64: 1>, scalar_prefetch = 0 : i64, scratch_operands = 0 : i64, tpu.core_type = #tpu.core_type<tc>, window_params = [{transform_indices = @transform_0, window_bounds = array<i64: 16, 32>}, {pipeline_mode = #tpu.pipeline_mode<synchronous>, transform_indices = @transform_1, window_bounds = array<i64: 16, 32>}, {pipeline_mode = #tpu.pipeline_mode<synchronous>, transform_indices = @transform_2, window_bounds = array<i64: 1, 16>}, {transform_indices = @transform_3, window_bounds = array<i64: 16, 16>}]} {
    %c0 = arith.constant 0 : index
    %c0_0 = arith.constant 0 : index
    %0 = vector.load %arg1[%c0, %c0_0] : memref<16x32xf32, #tpu.memory_space<vmem>>, vector<16x32xf32>
    %c0_1 = arith.constant 0 : index
    %c0_2 = arith.constant 0 : index
    %1 = vector.load %arg2[%c0_1, %c0_2] : memref<16x32xf32, #tpu.memory_space<vmem>>, vector<16x32xf32>
    %cst = arith.constant dense<0.000000e+00> : vector<16x16xf32>
    %2 = tpu.matmul %0, %1, %cst {dimension_numbers = #tpu.dot_dimension_numbers<[1], [1], [0], [0], [0, 0, 1, 0], [], []>} : vector<16x32xf32>, vector<16x32xf32>, vector<16x16xf32> -> vector<16x16xf32>
    %c0_3 = arith.constant 0 : index
    %c0_4 = arith.constant 0 : index
    %3 = vector.load %arg3[%c0_3, %c0_4] : memref<1x16xf32, #tpu.memory_space<vmem>>, vector<1x16xf32>
    %4 = vector.broadcast %3 : vector<1x16xf32> to vector<16x16xf32>
    %5 = arith.addf %2, %4 : vector<16x16xf32>
    %c0_5 = arith.constant 0 : index
    %c0_6 = arith.constant 0 : index
    %6 = vector.load %arg4[%c0_5, %c0_6] : memref<16x16xf32, #tpu.memory_space<vmem>>, vector<16x16xf32>
    tpu.vector_store %arg4[%c0_5, %c0_6], %5 {strides = array<i32>} : memref<16x16xf32, #tpu.memory_space<vmem>>, vector<16x16xf32>,
    return
  }
  func.func @transform_0(%arg0: i32) -> (i32, i32) {
    %c0_i32 = arith.constant 0 : i32
    %c0_i32_0 = arith.constant 0 : i32
    return %arg0, %c0_i32 : i32, i32
  }
  func.func @transform_1(%arg0: i32) -> (i32, i32) {
    %c0_i32 = arith.constant 0 : i32
    %c0_i32_0 = arith.constant 0 : i32
    %c0_i32_1 = arith.constant 0 : i32
    return %c0_i32, %c0_i32_0 : i32, i32
  }
  func.func @transform_2(%arg0: i32) -> (i32, i32) {
    %c0_i32 = arith.constant 0 : i32
    %c0_i32_0 = arith.constant 0 : i32
    %c0_i32_1 = arith.constant 0 : i32
    return %c0_i32, %c0_i32_0 : i32, i32
  }
  func.func @transform_3(%arg0: i32) -> (i32, i32) {
    %c0_i32 = arith.constant 0 : i32
    %c0_i32_0 = arith.constant 0 : i32
    return %arg0, %c0_i32 : i32, i32
  }
}

</mosaic_0001>

<bundles_post_ra>
// kernel: tpu_custom_call.1
= control target key start
LH: loop header
LB: loop body
LE: loop exit
PB: predicated region body
PF: predicated region fallthrough
CT: control target
= control target key end

     0   :  { %8 = vsyncpa [#allocation3], 0  ;;  %s296_s0 = inlined_call_operand.hbm [shape: f32[16,32], index: 0, kind: input, shape index: {}]   ;;  %s297_s1 = inlined_call_operand.hbm [shape: f32[16,32], index: 1, kind: input, shape index: {}]   ;;  %s298_s2 = inlined_call_operand.vmem [shape: f32[1,16], index: 2, kind: input, shape index: {}]   ;;  %s299_s3 = inlined_call_operand.hbm [shape: f32[16,16], index: 3, kind: output, shape index: {}]  }
   0x1   :  { %9 = vsyncpa [#allocation6], 0 }
   0x2   :  { %10 = vsyncpa [#allocation4], 0  ;;  %s250_s12 = smov [#allocation2]  }
   0x3   :  { %s16_s13 = sshll.u32 %s250_s12, 4  ;;  %s17_s13 = int_to_ptr.vmem [resolvable:$true] %s16_s13 }
   0x4   :  { %s192_s14 = scalar_lea.vmem %s17_s13, 256  ;;  %p197_p1 = scmp.lt.s32.totalorder %s17_s13, %s17_s13 }
   0x5   :  { %p193_p0 = scmp.ne.s32.totalorder %s17_s13, %s192_s14  ;;  %p198_p2 = scmp.lt.s32.totalorder %s192_s14, %s192_s14 }
   0x7   :  { %p199_p3 = por %p198_p2, %p197_p1 }
   0x9   :  { %p200_p4 = pnand %p199_p3, %p193_p0 }
   0xb   :  { %203 = shalt.err (!%p200_p4)
}
   0xc   :  { %s251_s15 = smov 128   ;;  %s252_s16 = smov 8  }
   0xd   :  { %22 = dma.hbm_to_vmem [thread:$0]  %s296_s0, 256, %s17_s13, [#allocation3], %s251_s15, %s251_s15, %s252_s16  }
   0xe   :  { %s253_s19 = smov [#allocation5]  }
   0xf   :  { %s28_s20 = sshll.u32 %s253_s19, 4  ;;  %s29_s20 = int_to_ptr.vmem [resolvable:$true] %s28_s20 }
  0x10   :  { %s212_s21 = scalar_lea.vmem %s29_s20, 256  ;;  %p217_p6 = scmp.lt.s32.totalorder %s29_s20, %s29_s20 }
  0x11   :  { %p213_p5 = scmp.ne.s32.totalorder %s29_s20, %s212_s21  ;;  %p218_p7 = scmp.lt.s32.totalorder %s212_s21, %s212_s21 }
  0x13   :  { %p219_p8 = por %p218_p7, %p217_p6 }
  0x15   :  { %p220_p9 = pnand %p219_p8, %p213_p5 }
  0x17   :  { %223 = shalt.err (!%p220_p9)
}
  0x18   :  { %34 = dma.hbm_to_vmem [thread:$0]  %s297_s1, 256, %s29_s20, [#allocation6], %s251_s15, %s251_s15, %s252_s16  }
  0x19   :  { %244 = dma.done.wait [#allocation3], 256  }
  0x1a   :  { %245 = vsyncadd [#allocation3], 4294967040 }
  0x1b   :  { %246 = dma.done.wait [#allocation6], 256  }
  0x1c   :  { %247 = vsyncadd [#allocation6], 4294967040  ;;  %vm54_vm0 = vcmask 261120   ;;  %v46_v0 = vld [vmem:[#allocation5 + $0x8] sm:$0xff]  ;;  %v45_v1 = vld [vmem:[#allocation5] sm:$0xff]  ;;  %vm142_vm1 = vcmask 130048  }
  0x1d   :  { %v43_v2 = vld [vmem:[#allocation2] sm:$0xff]  ;;  %172 = vmatprep.subr.msk.mxu0 %vm54_vm0, %v46_v0  ;;  %v44_v3 = vld [vmem:[#allocation2 + $0x8] sm:$0xff]  ;;  %s254_s1 = smov [#allocation7]  }
  0x1e   :  { %176 = vmatprep.mubr.msk.f32.mxu0 %vm54_vm0, %v43_v2  ;;  %173 = vmatpush3.xpose.msk.msra.mxu0 %vm54_vm0, %v46_v0  ;;  %v163_v4 = vld [vmem:[%s298_s2] ss:$0 sm:$0xff]  ;;  %s150_s25 = sshll.u32 %s254_s1, 4  ;;  %s151_s25 = int_to_ptr.vmem [resolvable:$true] %s150_s25 }
  0x1f   :  { %174 = vmatprep.subr.msk.mxu0 %vm54_vm0, %v45_v1  ;;  %s224_s26 = scalar_lea.vmem %s151_s25, 256  ;;  %p229_p11 = scmp.lt.s32.totalorder %s151_s25, %s151_s25 }
  0x20   :  { %p225_p10 = scmp.ne.s32.totalorder %s151_s25, %s224_s26  ;;  %p230_p12 = scmp.lt.s32.totalorder %s224_s26, %s224_s26 }
  0x22   :  { %175 = vmatpush3.xpose.msk.msra.mxu0 %vm54_vm0, %v45_v1  ;;  %p231_p13 = por %p230_p12, %p229_p11 }
  0x24   :  { %p232_p0 = pnand %p231_p13, %p225_p10 }
  0x25   :  { %177 = vmatmul.mubr.msk.f32.vlgmr.msra.gmra.mxu0 %vm54_vm0, %v44_v3 }
  0xe5   :  { %v178_v5 = vpop.f32.mrf.mxu0 }
  0xe6   :  { %v139_v6 = vadd.f32 %v178_v5, %v163_v4 }
  0xe7   :  { %v133_v7 = vpop.f32.mrf.mxu0 }
  0xe8   :  { %v134_v8 = vadd.f32 %v163_v4, %v133_v7  ;;  %144 = vst.msk [vmem:[#allocation7 + $0x8] sm:$0xff] %vm142_vm1, %v139_v6 }
  0xea   :  { %143 = vst.msk [vmem:[#allocation7] sm:$0xff] %vm142_vm1, %v134_v8 }
  0xeb   :  { %235 = shalt.err (!%p232_p0)
}
  0xec   :  { %156 = dma.vmem_to_hbm [thread:$0]  %s151_s25, 256, %s299_s3, [#allocation4], %s251_s15, %s251_s15, %s252_s16  }
  0xed   :  { %248 = dma.done.wait [#allocation4], 256  }
  0xee   :  { %249 = vsyncadd [#allocation4], 4294967040 }
  0xef   :  { %160 = vsyncpa [#allocation3], 1 }
  0xf0   :  { %161 = vsyncpa [#allocation6], 1 }
  0xf1   :  { %162 = vsyncpa [#allocation4], 1 }

</bundles_post_ra>
